<compile_context>
chip_gen: v7x
topology: tpu7x:2x2x1
jax: 0.10.0
libtpu: 0.0.40
codegen_flags: <defaults>
</compile_context>

<pallas_src>
import jax
import jax.numpy as jnp
from jax.experimental import pallas as pl
from jax.experimental.pallas import tpu as pltpu


def mlp_kernel(x_ref, w1_ref, b1_ref, w2_ref, b2_ref, w3t_ref, b3_ref, o_ref):
    x = x_ref[...]          # (2, TILE_B)   batch on lanes
    w1 = w1_ref[...]        # (10, 2)
    b1 = b1_ref[...]        # (10, 1)
    w2 = w2_ref[...]        # (10, 10)
    b2 = b2_ref[...]        # (10, 1)
    w3t = w3t_ref[...]      # (10, 1)
    b3 = b3_ref[...]        # (1, 1)

    # Layer 1 (2 -> 10): K=2 unrolled as VPU broadcast-FMA (no padded MXU dot).
    h1 = w1[:, 0:1] * x[0:1, :] + w1[:, 1:2] * x[1:2, :] + b1     # (10, TILE_B)
    h1 = jnp.maximum(h1, 0.0)                                     # ReLU

    # Layer 2 (10 -> 10): K=10 unrolled as VPU broadcast-FMA.
    acc = b2 + w2[:, 0:1] * h1[0:1, :]
    for k in range(1, 10):
        acc = acc + w2[:, k:k + 1] * h1[k:k + 1, :]
    h2 = jnp.maximum(acc, 0.0)                                    # (10, TILE_B)

    # Layer 3 (10 -> 1): weighted sublane reduction -> lane-dense (1, TILE_B) store.
    out = jnp.sum(w3t * h2, axis=0, keepdims=True) + b3
    o_ref[...] = out.astype(o_ref.dtype)


def circle_model_v3(x, params, tile_b=16384):
    """x: (B, 2) float32. Returns (B, 1) float32.

    tile_b: batch tile (lanes). Default 16 Ki rows keeps the double-buffered
    working set + (10, tile_b) activations well under v5e's 16 MiB scoped VMEM
    (and v7x's 64 MiB physical VMEM); raise it for very large B on v6e.
    """
    B = x.shape[0]
    w1, b1 = params["w1"], params["b1"]
    w2, b2 = params["w2"], params["b2"]
    w3t, b3 = params["w3t"], params["b3"]

    # Lane-dense tiling: tile must be a multiple of 128; pad B up to a whole tile.
    tile_b = max(128, pl.cdiv(tile_b, 128) * 128)
    tile_b = min(tile_b, pl.cdiv(B, 128) * 128)
    bp = pl.cdiv(B, tile_b) * tile_b
    grid = bp // tile_b

    # Transpose once in the wrapper so batch sits on lanes; zero-pad the tail tile.
    xt = jnp.zeros((2, bp), x.dtype).at[:, :B].set(x.T)

    const = lambda shape: pl.BlockSpec(shape, lambda i: (0, 0))   # resident weights
    out_t = pl.pallas_call(
        mlp_kernel,
        out_shape=jax.ShapeDtypeStruct((1, bp), jnp.float32),
        grid=(grid,),
        in_specs=[
            pl.BlockSpec((2, tile_b), lambda i: (0, i)),          # x^T batch tile
            const(w1.shape), const(b1.shape),
            const(w2.shape), const(b2.shape),
            const(w3t.shape), const(b3.shape),
        ],
        out_specs=pl.BlockSpec((1, tile_b), lambda i: (0, i)),
        compiler_params=pltpu.CompilerParams(
            dimension_semantics=("parallel",),
        ),
    )(xt, w1, b1, w2, b2, w3t, b3)

    # Drop padded columns, return PyTorch-shaped (B, 1).
    return out_t[:, :B].T


def init_params(key):
    """nn.Linear-style init U(-1/sqrt(fan_in), 1/sqrt(fan_in)).
    Weights in PyTorch (out, in) layout; biases as (out, 1) columns; head weight
    pre-transposed to (in, 1)."""
    def linear(k, fan_in, fan_out):
        kw, kb = jax.random.split(k)
        bound = 1.0 / (fan_in ** 0.5)
        w = jax.random.uniform(kw, (fan_out, fan_in), jnp.float32, -bound, bound)
        b = jax.random.uniform(kb, (fan_out, 1), jnp.float32, -bound, bound)
        return w, b

    k1, k2, k3 = jax.random.split(key, 3)
    w1, b1 = linear(k1, 2, 10)
    w2, b2 = linear(k2, 10, 10)
    w3, b3 = linear(k3, 10, 1)
    return {"w1": w1, "b1": b1, "w2": w2, "b2": b2, "w3t": w3.T, "b3": b3}


def reference(x, p):
    h1 = jnp.maximum(x @ p["w1"].T + p["b1"].T, 0.0)
    h2 = jnp.maximum(h1 @ p["w2"].T + p["b2"].T, 0.0)
    return h2 @ p["w3t"] + p["b3"].T


if __name__ == "__main__":
    key = jax.random.PRNGKey(0)
    k_params, k_x = jax.random.split(key)
    params = init_params(k_params)

    B = 1000                                   # not a multiple of 128 -> exercises tail padding
    x = jax.random.normal(k_x, (B, 2), dtype=jnp.float32)

    # Small tile so the demo actually runs a multi-step pipelined grid (1024/256 = 4 tiles).
    out = circle_model_v3(x, params, tile_b=256)
    out = jax.block_until_ready(out)

    ref = reference(x, params)
    assert out.shape == (B, 1), out.shape
    assert jnp.allclose(out, ref, atol=1e-5, rtol=1e-5), (out, ref)

    print("KERNEL_OK")
</pallas_src>

<mosaic_0001>
module attributes {stable_mosaic.version = 11 : i64} {
  func.func @mlp_kernel(%arg0: i32, %arg1: memref<2x256xf32, #tpu.memory_space<vmem>>, %arg2: memref<10x2xf32, #tpu.memory_space<vmem>>, %arg3: memref<10x1xf32, #tpu.memory_space<vmem>>, %arg4: memref<10x10xf32, #tpu.memory_space<vmem>>, %arg5: memref<10x1xf32, #tpu.memory_space<vmem>>, %arg6: memref<10x1xf32, #tpu.memory_space<vmem>>, %arg7: memref<1x1xf32, #tpu.memory_space<vmem>>, %arg8: memref<1x256xf32, #tpu.memory_space<vmem>>) attributes {dimension_semantics = [#tpu.dimension_semantics<parallel>], iteration_bounds = array<i64: 4>, scalar_prefetch = 0 : i64, scratch_operands = 0 : i64, tpu.core_type = #tpu.core_type<tc>, window_params = [{transform_indices = @transform_0, window_bounds = array<i64: 2, 256>}, {pipeline_mode = #tpu.pipeline_mode<synchronous>, transform_indices = @transform_1, window_bounds = array<i64: 10, 2>}, {pipeline_mode = #tpu.pipeline_mode<synchronous>, transform_indices = @transform_2, window_bounds = array<i64: 10, 1>}, {pipeline_mode = #tpu.pipeline_mode<synchronous>, transform_indices = @transform_3, window_bounds = array<i64: 10, 10>}, {pipeline_mode = #tpu.pipeline_mode<synchronous>, transform_indices = @transform_4, window_bounds = array<i64: 10, 1>}, {pipeline_mode = #tpu.pipeline_mode<synchronous>, transform_indices = @transform_5, window_bounds = array<i64: 10, 1>}, {pipeline_mode = #tpu.pipeline_mode<synchronous>, transform_indices = @transform_6, window_bounds = array<i64: 1, 1>}, {transform_indices = @transform_7, window_bounds = array<i64: 1, 256>}]} {
    %c0 = arith.constant 0 : index
    %c0_0 = arith.constant 0 : index
    %0 = vector.load %arg1[%c0, %c0_0] : memref<2x256xf32, #tpu.memory_space<vmem>>, vector<2x256xf32>
    %c0_1 = arith.constant 0 : index
    %c0_2 = arith.constant 0 : index
    %1 = vector.load %arg2[%c0_1, %c0_2] : memref<10x2xf32, #tpu.memory_space<vmem>>, vector<10x2xf32>
    %c0_3 = arith.constant 0 : index
    %c0_4 = arith.constant 0 : index
    %2 = vector.load %arg3[%c0_3, %c0_4] : memref<10x1xf32, #tpu.memory_space<vmem>>, vector<10x1xf32>
    %c0_5 = arith.constant 0 : index
    %c0_6 = arith.constant 0 : index
    %3 = vector.load %arg4[%c0_5, %c0_6] : memref<10x10xf32, #tpu.memory_space<vmem>>, vector<10x10xf32>
    %c0_7 = arith.constant 0 : index
    %c0_8 = arith.constant 0 : index
    %4 = vector.load %arg5[%c0_7, %c0_8] : memref<10x1xf32, #tpu.memory_space<vmem>>, vector<10x1xf32>
    %c0_9 = arith.constant 0 : index
    %c0_10 = arith.constant 0 : index
    %5 = vector.load %arg6[%c0_9, %c0_10] : memref<10x1xf32, #tpu.memory_space<vmem>>, vector<10x1xf32>
    %c0_11 = arith.constant 0 : index
    %c0_12 = arith.constant 0 : index
    %6 = vector.load %arg7[%c0_11, %c0_12] : memref<1x1xf32, #tpu.memory_space<vmem>>, vector<1x1xf32>
    %7 = vector.extract_strided_slice %1 {offsets = [0, 0], sizes = [10, 1], strides = [1, 1]} : vector<10x2xf32> to vector<10x1xf32>
    %8 = vector.extract_strided_slice %0 {offsets = [0, 0], sizes = [1, 256], strides = [1, 1]} : vector<2x256xf32> to vector<1x256xf32>
    %9 = vector.broadcast %7 : vector<10x1xf32> to vector<10x256xf32>
    %10 = vector.broadcast %8 : vector<1x256xf32> to vector<10x256xf32>
    %11 = arith.mulf %9, %10 : vector<10x256xf32>
    %12 = vector.extract_strided_slice %1 {offsets = [0, 1], sizes = [10, 1], strides = [1, 1]} : vector<10x2xf32> to vector<10x1xf32>
    %13 = vector.extract_strided_slice %0 {offsets = [1, 0], sizes = [1, 256], strides = [1, 1]} : vector<2x256xf32> to vector<1x256xf32>
    %14 = vector.broadcast %12 : vector<10x1xf32> to vector<10x256xf32>
    %15 = vector.broadcast %13 : vector<1x256xf32> to vector<10x256xf32>
    %16 = arith.mulf %14, %15 : vector<10x256xf32>
    %17 = arith.addf %11, %16 : vector<10x256xf32>
    %18 = vector.broadcast %2 : vector<10x1xf32> to vector<10x256xf32>
    %19 = arith.addf %17, %18 : vector<10x256xf32>
    %cst = arith.constant 0.000000e+00 : f32
    %20 = vector.broadcast %cst : f32 to vector<10x256xf32>
    %21 = arith.maximumf %19, %20 : vector<10x256xf32>
    %22 = vector.extract_strided_slice %3 {offsets = [0, 0], sizes = [10, 1], strides = [1, 1]} : vector<10x10xf32> to vector<10x1xf32>
    %23 = vector.extract_strided_slice %21 {offsets = [0, 0], sizes = [1, 256], strides = [1, 1]} : vector<10x256xf32> to vector<1x256xf32>
    %24 = vector.broadcast %22 : vector<10x1xf32> to vector<10x256xf32>
    %25 = vector.broadcast %23 : vector<1x256xf32> to vector<10x256xf32>
    %26 = arith.mulf %24, %25 : vector<10x256xf32>
    %27 = vector.broadcast %4 : vector<10x1xf32> to vector<10x256xf32>
    %28 = arith.addf %27, %26 : vector<10x256xf32>
    %29 = vector.extract_strided_slice %3 {offsets = [0, 1], sizes = [10, 1], strides = [1, 1]} : vector<10x10xf32> to vector<10x1xf32>
    %30 = vector.extract_strided_slice %21 {offsets = [1, 0], sizes = [1, 256], strides = [1, 1]} : vector<10x256xf32> to vector<1x256xf32>
    %31 = vector.broadcast %29 : vector<10x1xf32> to vector<10x256xf32>
    %32 = vector.broadcast %30 : vector<1x256xf32> to vector<10x256xf32>
    %33 = arith.mulf %31, %32 : vector<10x256xf32>
    %34 = arith.addf %28, %33 : vector<10x256xf32>
    %35 = vector.extract_strided_slice %3 {offsets = [0, 2], sizes = [10, 1], strides = [1, 1]} : vector<10x10xf32> to vector<10x1xf32>
    %36 = vector.extract_strided_slice %21 {offsets = [2, 0], sizes = [1, 256], strides = [1, 1]} : vector<10x256xf32> to vector<1x256xf32>
    %37 = vector.broadcast %35 : vector<10x1xf32> to vector<10x256xf32>
    %38 = vector.broadcast %36 : vector<1x256xf32> to vector<10x256xf32>
    %39 = arith.mulf %37, %38 : vector<10x256xf32>
    %40 = arith.addf %34, %39 : vector<10x256xf32>
    %41 = vector.extract_strided_slice %3 {offsets = [0, 3], sizes = [10, 1], strides = [1, 1]} : vector<10x10xf32> to vector<10x1xf32>
    %42 = vector.extract_strided_slice %21 {offsets = [3, 0], sizes = [1, 256], strides = [1, 1]} : vector<10x256xf32> to vector<1x256xf32>
    %43 = vector.broadcast %41 : vector<10x1xf32> to vector<10x256xf32>
    %44 = vector.broadcast %42 : vector<1x256xf32> to vector<10x256xf32>
    %45 = arith.mulf %43, %44 : vector<10x256xf32>
    %46 = arith.addf %40, %45 : vector<10x256xf32>
    %47 = vector.extract_strided_slice %3 {offsets = [0, 4], sizes = [10, 1], strides = [1, 1]} : vector<10x10xf32> to vector<10x1xf32>
    %48 = vector.extract_strided_slice %21 {offsets = [4, 0], sizes = [1, 256], strides = [1, 1]} : vector<10x256xf32> to vector<1x256xf32>
    %49 = vector.broadcast %47 : vector<10x1xf32> to vector<10x256xf32>
    %50 = vector.broadcast %48 : vector<1x256xf32> to vector<10x256xf32>
    %51 = arith.mulf %49, %50 : vector<10x256xf32>
    %52 = arith.addf %46, %51 : vector<10x256xf32>
    %53 = vector.extract_strided_slice %3 {offsets = [0, 5], sizes = [10, 1], strides = [1, 1]} : vector<10x10xf32> to vector<10x1xf32>
    %54 = vector.extract_strided_slice %21 {offsets = [5, 0], sizes = [1, 256], strides = [1, 1]} : vector<10x256xf32> to vector<1x256xf32>
    %55 = vector.broadcast %53 : vector<10x1xf32> to vector<10x256xf32>
    %56 = vector.broadcast %54 : vector<1x256xf32> to vector<10x256xf32>
    %57 = arith.mulf %55, %56 : vector<10x256xf32>
    %58 = arith.addf %52, %57 : vector<10x256xf32>
    %59 = vector.extract_strided_slice %3 {offsets = [0, 6], sizes = [10, 1], strides = [1, 1]} : vector<10x10xf32> to vector<10x1xf32>
    %60 = vector.extract_strided_slice %21 {offsets = [6, 0], sizes = [1, 256], strides = [1, 1]} : vector<10x256xf32> to vector<1x256xf32>
    %61 = vector.broadcast %59 : vector<10x1xf32> to vector<10x256xf32>
    %62 = vector.broadcast %60 : vector<1x256xf32> to vector<10x256xf32>
    %63 = arith.mulf %61, %62 : vector<10x256xf32>
    %64 = arith.addf %58, %63 : vector<10x256xf32>
    %65 = vector.extract_strided_slice %3 {offsets = [0, 7], sizes = [10, 1], strides = [1, 1]} : vector<10x10xf32> to vector<10x1xf32>
    %66 = vector.extract_strided_slice %21 {offsets = [7, 0], sizes = [1, 256], strides = [1, 1]} : vector<10x256xf32> to vector<1x256xf32>
    %67 = vector.broadcast %65 : vector<10x1xf32> to vector<10x256xf32>
    %68 = vector.broadcast %66 : vector<1x256xf32> to vector<10x256xf32>
    %69 = arith.mulf %67, %68 : vector<10x256xf32>
    %70 = arith.addf %64, %69 : vector<10x256xf32>
    %71 = vector.extract_strided_slice %3 {offsets = [0, 8], sizes = [10, 1], strides = [1, 1]} : vector<10x10xf32> to vector<10x1xf32>
    %72 = vector.extract_strided_slice %21 {offsets = [8, 0], sizes = [1, 256], strides = [1, 1]} : vector<10x256xf32> to vector<1x256xf32>
    %73 = vector.broadcast %71 : vector<10x1xf32> to vector<10x256xf32>
    %74 = vector.broadcast %72 : vector<1x256xf32> to vector<10x256xf32>
    %75 = arith.mulf %73, %74 : vector<10x256xf32>
    %76 = arith.addf %70, %75 : vector<10x256xf32>
    %77 = vector.extract_strided_slice %3 {offsets = [0, 9], sizes = [10, 1], strides = [1, 1]} : vector<10x10xf32> to vector<10x1xf32>
    %78 = vector.extract_strided_slice %21 {offsets = [9, 0], sizes = [1, 256], strides = [1, 1]} : vector<10x256xf32> to vector<1x256xf32>
    %79 = vector.broadcast %77 : vector<10x1xf32> to vector<10x256xf32>
    %80 = vector.broadcast %78 : vector<1x256xf32> to vector<10x256xf32>
    %81 = arith.mulf %79, %80 : vector<10x256xf32>
    %82 = arith.addf %76, %81 : vector<10x256xf32>
    %cst_13 = arith.constant 0.000000e+00 : f32
    %83 = vector.broadcast %cst_13 : f32 to vector<10x256xf32>
    %84 = arith.maximumf %82, %83 : vector<10x256xf32>
    %85 = vector.broadcast %5 : vector<10x1xf32> to vector<10x256xf32>
    %86 = arith.mulf %85, %84 : vector<10x256xf32>
    %cst_14 = arith.constant dense<0.000000e+00> : vector<256xf32>
    %87 = vector.multi_reduction <add>, %86, %cst_14 [0] : vector<10x256xf32> to vector<256xf32>
    %88 = vector.shape_cast %87 : vector<256xf32> to vector<1x256xf32>
    %89 = vector.broadcast %6 : vector<1x1xf32> to vector<1x256xf32>
    %90 = arith.addf %88, %89 : vector<1x256xf32>
    %c0_15 = arith.constant 0 : index
    %c0_16 = arith.constant 0 : index
    %91 = vector.load %arg8[%c0_15, %c0_16] : memref<1x256xf32, #tpu.memory_space<vmem>>, vector<1x256xf32>
    tpu.vector_store %arg8[%c0_15, %c0_16], %90 {strides = array<i32>} : memref<1x256xf32, #tpu.memory_space<vmem>>, vector<1x256xf32>,
    return
  }
  func.func @transform_0(%arg0: i32) -> (i32, i32) {
    %c0_i32 = arith.constant 0 : i32
    %c0_i32_0 = arith.constant 0 : i32
    return %c0_i32, %arg0 : i32, i32
  }
  func.func @transform_1(%arg0: i32) -> (i32, i32) {
    %c0_i32 = arith.constant 0 : i32
    %c0_i32_0 = arith.constant 0 : i32
    %c0_i32_1 = arith.constant 0 : i32
    return %c0_i32, %c0_i32_0 : i32, i32
  }
  func.func @transform_2(%arg0: i32) -> (i32, i32) {
    %c0_i32 = arith.constant 0 : i32
    %c0_i32_0 = arith.constant 0 : i32
    %c0_i32_1 = arith.constant 0 : i32
    return %c0_i32, %c0_i32_0 : i32, i32
  }
  func.func @transform_3(%arg0: i32) -> (i32, i32) {
    %c0_i32 = arith.constant 0 : i32
    %c0_i32_0 = arith.constant 0 : i32
    %c0_i32_1 = arith.constant 0 : i32
    return %c0_i32, %c0_i32_0 : i32, i32
  }
  func.func @transform_4(%arg0: i32) -> (i32, i32) {
    %c0_i32 = arith.constant 0 : i32
    %c0_i32_0 = arith.constant 0 : i32
    %c0_i32_1 = arith.constant 0 : i32
    return %c0_i32, %c0_i32_0 : i32, i32
  }
  func.func @transform_5(%arg0: i32) -> (i32, i32) {
    %c0_i32 = arith.constant 0 : i32
    %c0_i32_0 = arith.constant 0 : i32
    %c0_i32_1 = arith.constant 0 : i32
    return %c0_i32, %c0_i32_0 : i32, i32
  }
  func.func @transform_6(%arg0: i32) -> (i32, i32) {
    %c0_i32 = arith.constant 0 : i32
    %c0_i32_0 = arith.constant 0 : i32
    %c0_i32_1 = arith.constant 0 : i32
    return %c0_i32, %c0_i32_0 : i32, i32
  }
  func.func @transform_7(%arg0: i32) -> (i32, i32) {
    %c0_i32 = arith.constant 0 : i32
    %c0_i32_0 = arith.constant 0 : i32
    return %c0_i32, %arg0 : i32, i32
  }
}

</mosaic_0001>

<bundles_post_ra>
// kernel: tpu_custom_call.1
= control target key start
LH: loop header
LB: loop body
LE: loop exit
PB: predicated region body
PF: predicated region fallthrough
CT: control target
= control target key end

     0   :  { %s1175_s0 = inlined_call_operand.vmem [shape: f32[2,1024], index: 0, kind: input, shape index: {}]   ;;  %s1176_s1 = inlined_call_operand.vmem [shape: f32[10,2], index: 1, kind: input, shape index: {}]   ;;  %s1177_s2 = inlined_call_operand.vmem [shape: f32[10,1], index: 2, kind: input, shape index: {}]   ;;  %s1178_s3 = inlined_call_operand.vmem [shape: f32[10,10], index: 3, kind: input, shape index: {}]   ;;  %s1179_s4 = inlined_call_operand.vmem [shape: f32[10,1], index: 4, kind: input, shape index: {}]   ;;  %s1180_s5 = inlined_call_operand.vmem [shape: f32[10,1], index: 5, kind: input, shape index: {}]   ;;  %s1181_s6 = inlined_call_operand.<no memory space> [shape: f32[1,1], index: 6, kind: input, shape index: {}]   ;;  %s1182_s7 = inlined_call_operand.hbm [shape: f32[1,1024], index: 7, kind: output, shape index: {}]  }
   0x1   :  { %v12_v0 = vstv %s1181_s6 }
   0x2   :  { %13 = vst [vmem:[#allocation2] sm:$0x1] %v12_v0 }
   0x3   :  { %14 = vsyncpa [#allocation4], 0 }
   0x4   :  { %16 = vsyncpa [#allocation4 + $0x1], 0  ;;  %s976_s26 = smov 0   ;;  %s978_s27 = smov 0  }
   0x5   :  { %s980_s28 = smov 0   ;;  %s982_s29 = smov 0  }
   0x6 LB: > { %s997_s6 = sadd.s32 4294967295, %s919_s29   ;;  %s774_s30 = sadd.s32 4294967294, %s919_s29   ;;  %s919_s29 = sphi %s982_s29, %s1188_s29   ;;  %s915_s28 = sphi %s980_s28, %s1187_s28   ;;  %s911_s27 = sphi %s978_s27, %s1186_s27   ;;  %s907_s26 = sphi %s976_s26, %s1185_s26  }
   0x7   : > { %s1001_s8 = sadd.s32 1, %s919_s29   ;;  %s181_s9 = sadd.s32 1, %s915_s28 }
   0x8   : > { %s178_s10 = ssub.s32 %s919_s29, %s1001_s8  ;;  %p191_p0 = scmp.ne.s32.totalorder %s915_s28, %s911_s27 }
   0x9   : > { %p179_p1 = scmp.eq.s32.totalorder %s178_s10, 0  ;;  %p192_p2 = scmp.eq.s32.totalorder %s997_s6, 3 }
   0xa   : > { %p197_p3 = scmp.ne.s32.totalorder %s911_s27, %s907_s26  ;;  %p198_p4 = scmp.eq.s32.totalorder %s774_s30, 3 }
   0xb   : > { %s1012_s11 = scalar_select %p179_p1, %s915_s28, %s181_s9  }
   0xc   : > { %p1014_p5 = por %p192_p2, %p191_p0  ;;  %p1018_p6 = por %p198_p4, %p197_p3 }
   0xd   : > { %p777_p7 = scmp.ge.s32.totalorder %s919_s29, 1  ;;  %p243_p8 = scmp.lt.s32.totalorder %s919_s29, 5 }
   0xf   : > { %p244_p9 = pnand %p777_p7, %p243_p8 }
  0x10   : > { %v285_v1 = vld [vmem:[%s1177_s2] sm:$0xff] (!%p244_p9)  ;;  %v921_v3 = vmov (!%p244_p9), 1   ;;  %v922_v4 = vmov (!%p244_p9), 0   ;;  %v288_v5 = vld [vmem:[%s1178_s3 + $0x8] sm:$0x3] (!%p244_p9)  ;;  %v923_v7 = vmov (!%p244_p9), 3   ;;  %v305_v25 = vlaneseq (!%p244_p9) }
  0x11   : > { %247 = sbr.rel (%p244_p9) target bundleno = 269 (0x10d), region = 48  ;;  %v283_v2 = vld [vmem:[%s1176_s1] sm:$0xff] (!%p244_p9)  ;;  %837 = vset.pattern.permute.xlu0 (!%p244_p9), %v921_v3  ;;  %838 = vset.pattern.permute.xlu1 (!%p244_p9), %v922_v4  ;;  %v290_v9 = vld [vmem:[%s1179_s4 + $0x8] sm:$0x3] (!%p244_p9)  ;;  %v924_v11 = vmov (!%p244_p9), 2   ;;  %v925_v13 = vmov (!%p244_p9), 6  }
  0x12   : > { %363 = vperm.xlu1 (!%p244_p9), %838, %v285_v1   ;;  %328 = vperm.xlu0 (!%p244_p9), %837, %v283_v2   ;;  %v287_v6 = vld [vmem:[%s1178_s3] sm:$0xff] (!%p244_p9)  ;;  %v284_v10 = vld [vmem:[%s1176_s1 + $0x8] sm:$0x3] (!%p244_p9)  ;;  %v926_v14 = vmov (!%p244_p9), 7   ;;  %v927_v15 = vmov (!%p244_p9), 9   ;;  %v928_v16 = vmov (!%p244_p9), 4  }
  0x13   : > { %v289_v8 = vld [vmem:[%s1179_s4] sm:$0xff] (!%p244_p9)  ;;  %v286_v12 = vld [vmem:[%s1177_s2 + $0x8] sm:$0x3] (!%p244_p9)  ;;  %v929_v18 = vmov (!%p244_p9), 5   ;;  %v930_v19 = vmov (!%p244_p9), 8   ;;  %s779_s19 = sshll.u32 (!%p244_p9), %s997_s6, 1 }
  0x14   : > { %v291_v17 = vld [vmem:[%s1180_s5] sm:$0xff] (!%p244_p9)  ;;  %v292_v20 = vld [vmem:[%s1180_s5 + $0x8] sm:$0x3] (!%p244_p9)  ;;  %p276_p10 = scmp.lt.s32.totalorder (!%p244_p9), %s779_s19, 7  ;;  %v1061_v27 = vshrl.u32 (!%p244_p9), %v305_v25, 7  ;;  %vm649_vm0 = vcmask (!%p244_p9), 1041408  }
  0x15   : > { %v293_v21 = vld [vmem:[#allocation2] sm:$0x1] (!%p244_p9)  ;;  %s272_s24 = sand.u32 (!%p244_p9), 1, %s911_s27   ;;  %s786_s30 = sshll.u32 (!%p244_p9), %s997_s6, 5  ;;  %vm697_vm1 = vcmp.lt.s32.totalorder (!%p244_p9), %v305_v25, 256 }
  0x16   : > { %386 = vperm.xlu1 (!%p244_p9), %838, %v288_v5   ;;  %416 = vperm.xlu0 (!%p244_p9), %837, %v287_v6   ;;  %v1067_v30 = vsub.s32 (!%p244_p9), 1, %v1061_v27  ;;  %v1070_v31 = vsub.s32 (!%p244_p9), 3, %v1061_v27  ;;  %v1073_v32 = vsub.s32 (!%p244_p9), 0, %v1061_v27  ;;  %v311_v33 = vsub.s32 (!%p244_p9), 2, %v1061_v27  ;;  %s778_s25 = sshll.u32 (!%p244_p9), %s272_s24, 1  ;;  %s1133_s16 = scalar_lea.hbm (!%p244_p9), %s1182_s7, %s786_s30 }
  0x17   : > { %s274_s9 = scalar_lea.vmem (!%p244_p9), [#allocation3], %s778_s25  ;;  %s701_s17 = scalar_lea.sflag (!%p244_p9), [#allocation4], %s272_s24 }
  0x18   : > { %s1190_s19 = smov (!%p276_p10, %s779_s19), 7  ;;  %s715_s10 = sshll.u32 %s274_s9, 4  ;;  %s1135_s10 = int_to_ptr.vmem [resolvable:$true] %s715_s10 }
  0x19   : > { %s780_s20 = sshll.u32 %s1190_s19, 1  ;;  %s857_s18 = scalar_lea.vmem %s1135_s10, 32 }
  0x1a   : > { %381 = vperm.xlu1 %838, %v287_v6   ;;  %844 = vset.pattern.permute.xlu0 %v923_v7  ;;  %s279_s23 = scalar_lea.vmem %s1175_s0, %s780_s20  ;;  %p858_p11 = scmp.ne.s32.totalorder %s1135_s10, %s857_s18 }
  0x1b   : > { %464 = vperm.xlu0 %844, %v287_v6   ;;  %v282_v34 = vld [vmem:[%s279_s23] sm:$0xf]  ;;  %s932_s6 = smov [#allocation3]  }
  0x1c   : > { %v338_v37 = vrot.slane %v282_v34, %v1067_v30  ;;  %v342_v38 = vrot.slane %v282_v34, %v1070_v31  ;;  %v308_v39 = vrot.slane %v282_v34, %v1073_v32  ;;  %v312_v40 = vrot.slane %v282_v34, %v311_v33  ;;  %p859_p12 = pnand %p858_p11, %p1014_p5  ;;  %s861_s19 = sshll.u32 %s932_s6, 4  ;;  %s862_s19 = int_to_ptr.vmem [resolvable:$false] %s861_s19 }
  0x1d   : > { %v521_v34 = vsub.s32 5, %v1061_v27  ;;  %s863_s20 = scalar_lea.vmem %s862_s19, 64  ;;  %p864_p0 = scmp.lt.s32.totalorder %s1135_s10, %s862_s19 }
  0x1e   : > { %839 = vset.pattern.permute.xlu1 %v921_v3  ;;  %v348_v42 = vrot.slane %v338_v37, %v1067_v30  ;;  %v352_v43 = vrot.slane %v342_v38, %v1067_v30  ;;  %v318_v44 = vrot.slane %v308_v39, %v1073_v32  ;;  %v322_v45 = vrot.slane %v312_v40, %v1073_v32  ;;  %p860_p13 = pneg %p859_p12  ;;  %p865_p1 = scmp.lt.s32.totalorder %s863_s20, %s857_s18 }
  0x1f   : > { %420 = vperm.xlu1 %839, %v288_v5   ;;  %845 = vset.pattern.permute.xlu0 %v922_v4 }
  0x20   : > { %296 = vperm.xlu0 %845, %v283_v2   ;;  %p866_p2 = por %p865_p1, %p864_p0 }
  0x22   : > { %p867_p3 = pnand %p866_p2, %p860_p13 }
  0x23   : > { %840 = vset.pattern.permute.xlu1 %v922_v4 }
  0x24   : > { %403 = vperm.xlu1 %840, %v289_v8   ;;  %408 = vperm.xlu0 %845, %v290_v9   ;;  %v569_v8 = vsub.s32 7, %v1061_v27 }
  0x28   : > { %841 = vset.pattern.permute.xlu1 %v924_v11  ;;  %301 = vperm.xlu0 %845, %v284_v10  }
  0x29   : > { %444 = vperm.xlu1 %841, %v288_v5  }
  0x2c   : > { %368 = vperm.xlu0 %845, %v286_v12  }
  0x2d   : > { %440 = vperm.xlu1 %841, %v287_v6  }
  0x30   : > { %848 = vset.pattern.permute.xlu0 %v925_v13 }
  0x31   : > { %842 = vset.pattern.permute.xlu1 %v921_v3  ;;  %540 = vperm.xlu0 %848, %v288_v5  }
  0x32   : > { %332 = vperm.xlu1 %842, %v284_v10  }
  0x35   : > { %851 = vset.pattern.permute.xlu0 %v926_v14 }
  0x36   : > { %843 = vset.pattern.permute.xlu1 %v923_v7  ;;  %560 = vperm.xlu0 %851, %v287_v6   ;;  %v545_v7 = vsub.s32 6, %v1061_v27 }
  0x37   : > { %468 = vperm.xlu1 %843, %v288_v5  }
  0x3a   : > { %853 = vset.pattern.permute.xlu0 %v927_v15 }
  0x3b   : > { %846 = vset.pattern.permute.xlu1 %v928_v16  ;;  %612 = vperm.xlu0 %853, %v288_v5  }
  0x3c   : > { %492 = vperm.xlu1 %846, %v288_v5  }
  0x3f   : > { %856 = vset.pattern.permute.xlu0 %v922_v4 }
  0x40   : > { %488 = vperm.xlu1 %846, %v287_v6   ;;  %637 = vperm.xlu0 %856, %v291_v17  }
  0x44   : > { %847 = vset.pattern.permute.xlu1 %v929_v18 }
  0x45   : > { %516 = vperm.xlu1 %847, %v288_v5  }
  0x49   : > { %512 = vperm.xlu1 %847, %v287_v6  }
  0x4d   : > { %849 = vset.pattern.permute.xlu1 %v925_v13 }
  0x4e   : > { %536 = vperm.xlu1 %849, %v287_v6  }
  0x52   : > { %850 = vset.pattern.permute.xlu1 %v926_v14 }
  0x53   : > { %564 = vperm.xlu1 %850, %v288_v5  }
  0x57   : > { %852 = vset.pattern.permute.xlu1 %v930_v19 }
  0x58   : > { %588 = vperm.xlu1 %852, %v288_v5  }
  0x5c   : > { %584 = vperm.xlu1 %852, %v287_v6  }
  0x60   : > { %854 = vset.pattern.permute.xlu1 %v927_v15 }
  0x61   : > { %608 = vperm.xlu1 %854, %v287_v6  }
  0x65   : > { %855 = vset.pattern.permute.xlu1 %v922_v4 }
  0x66   : > { %642 = vperm.xlu1 %855, %v292_v20  }
  0x6a   : > { %668 = vperm.xlu1 %855, %v293_v21  }
  0x91   : > { %v364_v22 = vpop.permute.xlu1 %363  ;;  %v329_v24 = vpop.permute.xlu0 %328 }
  0x92   : > { %v353_v48 = vmul.f32 %v348_v42, %v329_v24  ;;  %v354_v49 = vmul.f32 %v352_v43, %v329_v24 }
  0x95   : > { %v387_v23 = vpop.permute.xlu1 %386  ;;  %v417_v28 = vpop.permute.xlu0 %416 }
  0x99   : > { %v382_v26 = vpop.permute.xlu1 %381 }
  0x9a   : > { %v1076_v36 = vpop.permute.xlu0 %464 }
  0x9e   : > { %v421_v29 = vpop.permute.xlu1 %420 }
  0x9f   : > { %v297_v46 = vpop.permute.xlu0 %296 }
  0xa0   : > { %v323_v50 = vmul.f32 %v318_v44, %v297_v46  ;;  %v324_v51 = vmul.f32 %v322_v45, %v297_v46 }
  0xa2   : > { %v357_v52 = vadd.f32 %v353_v48, %v323_v50  ;;  %v358_v53 = vadd.f32 %v354_v49, %v324_v51 }
  0xa3   : > { %v404_v35 = vpop.permute.xlu1 %403  ;;  %v409_v63 = vpop.permute.xlu0 %408 }
  0xa4   : > { %v371_v55 = vadd.f32 %v364_v22, %v357_v52  ;;  %v372_v56 = vadd.f32 %v364_v22, %v358_v53 }
  0xa6   : > { %v1085_v58 = vmax.f32 %v371_v55, 0.0  ;;  %v1087_v59 = vmax.f32 %v372_v56, 0.0 }
  0xa7   : > { %v302_v14 = vpop.permute.xlu0 %301 }
  0xa8   : > { %v445_v41 = vpop.permute.xlu1 %444  ;;  %v392_v61 = vrot.slane %v1085_v58, %v1073_v32  ;;  %v396_v62 = vrot.slane %v1087_v59, %v1073_v32  ;;  %v426_v5 = vrot.slane %v1085_v58, %v1067_v30  ;;  %v430_v6 = vrot.slane %v1087_v59, %v1067_v30 }
  0xa9   : > { %v450_v12 = vrot.slane %v1085_v58, %v311_v33  ;;  %v454_v13 = vrot.slane %v1087_v59, %v311_v33  ;;  %v325_v15 = vmul.f32 %v318_v44, %v302_v14  ;;  %v326_v16 = vmul.f32 %v322_v45, %v302_v14 }
  0xaa   : > { %v399_v1 = vmul.f32 %v392_v61, %v387_v23  ;;  %v400_v2 = vmul.f32 %v396_v62, %v387_v23  ;;  %v397_v3 = vmul.f32 %v392_v61, %v382_v26  ;;  %v398_v4 = vmul.f32 %v396_v62, %v382_v26 }
  0xab   : > { %v433_v21 = vmul.f32 %v426_v5, %v421_v29  ;;  %v434_v22 = vmul.f32 %v430_v6, %v421_v29  ;;  %v431_v23 = vmul.f32 %v426_v5, %v417_v28  ;;  %v432_v24 = vmul.f32 %v430_v6, %v417_v28  ;;  %v369_v48 = vpop.permute.xlu0 %368 }
  0xac   : > { %v441_v47 = vpop.permute.xlu1 %440  ;;  %v413_v10 = vadd.f32 %v409_v63, %v399_v1  ;;  %v414_v11 = vadd.f32 %v409_v63, %v400_v2  ;;  %v411_v19 = vadd.f32 %v404_v35, %v397_v3  ;;  %v412_v20 = vadd.f32 %v404_v35, %v398_v4 }
  0xad   : > { %v497_v26 = vsub.s32 4, %v1061_v27  ;;  %v457_v40 = vmul.f32 %v450_v12, %v445_v41  ;;  %v458_v33 = vmul.f32 %v454_v13, %v445_v41  ;;  %v478_v35 = vrot.slane %v1087_v59, %v1070_v31 }
  0xae   : > { %v437_v38 = vadd.f32 %v433_v21, %v413_v10  ;;  %v438_v39 = vadd.f32 %v434_v22, %v414_v11  ;;  %v435_v29 = vadd.f32 %v431_v23, %v411_v19  ;;  %v455_v28 = vmul.f32 %v450_v12, %v441_v47 }
  0xaf   : > { %v456_v45 = vmul.f32 %v454_v13, %v441_v47  ;;  %v498_v51 = vrot.slane %v1085_v58, %v497_v26  ;;  %v502_v52 = vrot.slane %v1087_v59, %v497_v26  ;;  %v526_v55 = vrot.slane %v1087_v59, %v521_v34 }
  0xb0   : > { %v461_v41 = vadd.f32 %v457_v40, %v437_v38  ;;  %v462_v53 = vadd.f32 %v458_v33, %v438_v39  ;;  %v546_v47 = vrot.slane %v1085_v58, %v545_v7  ;;  %v550_v1 = vrot.slane %v1087_v59, %v545_v7  ;;  %v541_v10 = vpop.permute.xlu0 %540 }
  0xb1   : > { %v333_v54 = vpop.permute.xlu1 %332  ;;  %v459_v5 = vadd.f32 %v455_v28, %v435_v29  ;;  %v570_v11 = vrot.slane %v1085_v58, %v569_v8  ;;  %v574_v12 = vrot.slane %v1087_v59, %v569_v8  ;;  %v480_v7 = vmul.f32 %v478_v35, %v1076_v36 }
  0xb2   : > { %v355_v17 = vmul.f32 %v348_v42, %v333_v54  ;;  %v356_v18 = vmul.f32 %v352_v43, %v333_v54  ;;  %v474_v42 = vrot.slane %v1085_v58, %v1070_v31  ;;  %v436_v43 = vadd.f32 %v432_v24, %v412_v20 }
  0xb3   : > { %v522_v54 = vrot.slane %v1085_v58, %v521_v34  ;;  %v553_v19 = vmul.f32 %v546_v47, %v541_v10  ;;  %v554_v20 = vmul.f32 %v550_v1, %v541_v10 }
  0xb4   : > { %v359_v46 = vadd.f32 %v355_v17, %v325_v15  ;;  %v360_v44 = vadd.f32 %v356_v18, %v326_v16  ;;  %v460_v6 = vadd.f32 %v456_v45, %v436_v43  ;;  %v479_v17 = vmul.f32 %v474_v42, %v1076_v36 }
  0xb5   : > { %v561_v39 = vpop.permute.xlu0 %560 }
  0xb6   : > { %v469_v57 = vpop.permute.xlu1 %468  ;;  %v373_v61 = vadd.f32 %v369_v48, %v359_v46  ;;  %v374_v31 = vadd.f32 %v369_v48, %v360_v44  ;;  %v483_v58 = vadd.f32 %v479_v17, %v459_v5  ;;  %v484_v23 = vadd.f32 %v480_v7, %v460_v6 }
  0xb7   : > { %v481_v49 = vmul.f32 %v474_v42, %v469_v57  ;;  %v482_v50 = vmul.f32 %v478_v35, %v469_v57 }
  0xb8   : > { %v377_v15 = vmax.f32 %v373_v61, 0.0  ;;  %v378_v16 = vmax.f32 %v374_v31, 0.0 }
  0xb9   : > { %v485_v57 = vadd.f32 %v481_v49, %v461_v41  ;;  %v486_v2 = vadd.f32 %v482_v50, %v462_v53 }
  0xba   : > { %v594_v34 = vrot.slane %v377_v15, %v1073_v32  ;;  %v598_v38 = vrot.slane %v378_v16, %v1073_v32  ;;  %v622_v45 = vrot.slane %v378_v16, %v1067_v30  ;;  %v613_v50 = vpop.permute.xlu0 %612 }
  0xbb   : > { %v493_v60 = vpop.permute.xlu1 %492 }
  0xbc   : > { %v505_v62 = vmul.f32 %v498_v51, %v493_v60  ;;  %v506_v63 = vmul.f32 %v502_v52, %v493_v60 }
  0xbe   : > { %v509_v13 = vadd.f32 %v505_v62, %v485_v57  ;;  %v510_v14 = vadd.f32 %v506_v63, %v486_v2  ;;  %v626_v63 = vmul.f32 %v622_v45, %v613_v50 }
  0xbf   : > { %v1093_v0 = vpop.permute.xlu1 %488  ;;  %v638_v16 = vpop.permute.xlu0 %637 }
  0xc0   : > { %v503_v18 = vmul.f32 %v498_v51, %v1093_v0 }
  0xc2   : > { %v507_v36 = vadd.f32 %v503_v18, %v483_v58 }
  0xc4   : > { %v517_v9 = vpop.permute.xlu1 %516 }
  0xc5   : > { %v529_v3 = vmul.f32 %v522_v54, %v517_v9  ;;  %v530_v4 = vmul.f32 %v526_v55, %v517_v9  ;;  %v504_v9 = vmul.f32 %v502_v52, %v1093_v0 }
  0xc7   : > { %v533_v21 = vadd.f32 %v529_v3, %v509_v13  ;;  %v534_v22 = vadd.f32 %v530_v4, %v510_v14  ;;  %v508_v40 = vadd.f32 %v504_v9, %v484_v23 }
  0xc8   : > { %v513_v37 = vpop.permute.xlu1 %512 }
  0xc9   : > { %v527_v59 = vmul.f32 %v522_v54, %v513_v37  ;;  %v528_v8 = vmul.f32 %v526_v55, %v513_v37  ;;  %v557_v44 = vadd.f32 %v553_v19, %v533_v21  ;;  %v558_v42 = vadd.f32 %v554_v20, %v534_v22 }
  0xca   : > { %v618_v37 = vrot.slane %v377_v15, %v1067_v30  ;;  %v575_v55 = vmul.f32 %v570_v11, %v561_v39 }
  0xcb   : > { %v531_v43 = vadd.f32 %v527_v59, %v507_v36  ;;  %v532_v28 = vadd.f32 %v528_v8, %v508_v40 }
  0xcc   : > { %v625_v62 = vmul.f32 %v618_v37, %v613_v50 }
  0xcd   : > { %v537_v56 = vpop.permute.xlu1 %536 }
  0xce   : > { %v551_v33 = vmul.f32 %v546_v47, %v537_v56  ;;  %v552_v46 = vmul.f32 %v550_v1, %v537_v56  ;;  %v576_v56 = vmul.f32 %v574_v12, %v561_v39 }
  0xd0   : > { %v555_v51 = vadd.f32 %v551_v33, %v531_v43  ;;  %v556_v52 = vadd.f32 %v552_v46, %v532_v28 }
  0xd2   : > { %v565_v60 = vpop.permute.xlu1 %564  ;;  %v579_v47 = vadd.f32 %v575_v55, %v555_v51  ;;  %v580_v1 = vadd.f32 %v576_v56, %v556_v52 }
  0xd3   : > { %v577_v24 = vmul.f32 %v570_v11, %v565_v60  ;;  %v578_v26 = vmul.f32 %v574_v12, %v565_v60 }
  0xd5   : > { %v581_v48 = vadd.f32 %v577_v24, %v557_v44  ;;  %v582_v49 = vadd.f32 %v578_v26, %v558_v42 }
  0xd7   : > { %v589_v0 = vpop.permute.xlu1 %588 }
  0xd8   : > { %v601_v35 = vmul.f32 %v594_v34, %v589_v0  ;;  %v602_v29 = vmul.f32 %v598_v38, %v589_v0 }
  0xda   : > { %v605_v53 = vadd.f32 %v601_v35, %v581_v48  ;;  %v606_v54 = vadd.f32 %v602_v29, %v582_v49 }
  0xdb   : > { %v585_v41 = vpop.permute.xlu1 %584 }
  0xdc   : > { %v599_v61 = vmul.f32 %v594_v34, %v585_v41  ;;  %v600_v31 = vmul.f32 %v598_v38, %v585_v41  ;;  %v629_v2 = vadd.f32 %v625_v62, %v605_v53  ;;  %v630_v3 = vadd.f32 %v626_v63, %v606_v54 }
  0xdd   : > { %v931_v34 = vmov 1966171168  }
  0xde   : > { %v603_v30 = vadd.f32 %v599_v61, %v579_v47  ;;  %v604_v4 = vadd.f32 %v600_v31, %v580_v1  ;;  %v633_v14 = vmax.f32 %v629_v2, 0.0  ;;  %v634_v15 = vmax.f32 %v630_v3, 0.0 }
  0xdf   : > { %v681_v38 = vunpack.c.l.s4 %v931_v34 }
  0xe0   : > { %v609_v57 = vpop.permute.xlu1 %608 }
  0xe1   : > { %v623_v5 = vmul.f32 %v618_v37, %v609_v57  ;;  %v624_v6 = vmul.f32 %v622_v45, %v609_v57  ;;  %v682_v33 = vunpack.c.0.s8 %v681_v38 }
  0xe3   : > { %v627_v10 = vadd.f32 %v623_v5, %v603_v30  ;;  %v628_v13 = vadd.f32 %v624_v6, %v604_v4  ;;  %v685_v29 = vsub.s32 %v682_v33, %v1061_v27 }
  0xe5   : > { %v643_v11 = vpop.permute.xlu1 %642  ;;  %v631_v12 = vmax.f32 %v627_v10, 0.0  ;;  %v632_v60 = vmax.f32 %v628_v13, 0.0 }
  0xe6   : > { %v647_v17 = vmul.f32 %v643_v11, %v633_v14  ;;  %v648_v7 = vmul.f32 %v643_v11, %v634_v15 }
  0xe7   : > { %v645_v18 = vmul.f32 %v638_v16, %v631_v12  ;;  %v646_v9 = vmul.f32 %v638_v16, %v632_v60 }
  0xe8   : > { %v650_v19 = vsel %vm649_vm0, %v647_v17, 0.0  ;;  %v658_v20 = vsel %vm649_vm0, %v648_v7, 0.0 }
  0xe9   : > { %v651_v21 = vadd.f32 %v650_v19, %v645_v18  ;;  %v659_v22 = vadd.f32 %v658_v20, %v646_v9  ;;  %v669_v40 = vpop.permute.xlu1 %668 }
  0xea   : > { %v674_v35 = vrot.slane %v669_v40, %v1073_v32 }
  0xeb   : > { %v652_v58 = vrot.slane %v651_v21, 4  ;;  %v660_v23 = vrot.slane %v659_v22, 4 }
  0xed   : > { %v653_v59 = vadd.f32 %v652_v58, %v651_v21  ;;  %v661_v8 = vadd.f32 %v660_v23, %v659_v22 }
  0xef   : > { %v654_v24 = vrot.slane %v653_v59, 2  ;;  %v662_v26 = vrot.slane %v661_v8, 2 }
  0xf1   : > { %v655_v39 = vadd.f32 %v654_v24, %v653_v59  ;;  %v663_v36 = vadd.f32 %v662_v26, %v661_v8 }
  0xf3   : > { %v656_v46 = vrot.slane %v655_v39, 1  ;;  %v664_v0 = vrot.slane %v663_v36, 1 }
  0xf5   : > { %v657_v44 = vadd.f32 %v656_v46, %v655_v39  ;;  %v665_v42 = vadd.f32 %v664_v0, %v663_v36 }
  0xf7   : > { %v675_v43 = vadd.f32 %v674_v35, %v657_v44  ;;  %v676_v28 = vadd.f32 %v674_v35, %v665_v42 }
  0xf9   : > { %v679_v37 = vcombine.low %v675_v43, %v676_v28 }
  0xfb   : > { %v686_v45 = vrot.slane %v679_v37, %v685_v29 }
  0xfd   : > { %v693_v48 = vrot.slane %v686_v45, %v685_v29 }
  0xff   : > { %699 = vst.msk [vmem:[%s274_s9] sm:$0x3] %vm697_vm1, %v693_v48 }
 0x100   : > { %870 = shalt.err (!%p867_p3)
}
 0x101   : > { %s871_s21 = scalar_lea.hbm %s1133_s16, 32  ;;  %s875_s24 = scalar_lea.hbm %s1182_s7, 128 }
 0x102   : > { %p872_p4 = scmp.ne.s32.totalorder %s1133_s16, %s871_s21  ;;  %p876_p9 = scmp.lt.u32.totalorder %s1133_s16, %s1182_s7 }
 0x103   : > { %p877_p10 = scmp.lt.u32.totalorder %s875_s24, %s871_s21  ;;  %p879_p12 = scmp.lt.u32.totalorder %s871_s21, %s1133_s16 }
 0x104   : > { %p873_p7 = pnand %p872_p4, %p1014_p5 }
 0x105   : > { %p878_p11 = por %p877_p10, %p876_p9 }
 0x106   : > { %p874_p8 = pneg %p873_p7 }
 0x107   : > { %p880_p13 = por %p879_p12, %p878_p11 }
 0x109   : > { %p881_p0 = pnand %p880_p13, %p874_p8 }
 0x10b   : > { %884 = shalt.err (!%p881_p0)
}
 0x10c   : > { %787 = dma.vmem_to_hbm [thread:$0]  (%p1014_p5), %s1135_s10, 32, %s1133_s16, %s701_s17  }
 0x10d PF: > { %p793_p1 = scmp.ge.s32.totalorder %s919_s29, 2  ;;  %s727_s9 = sand.u32 1, %s907_s26  }
 0x10e   : > { %s728_s14 = scalar_lea.sflag [#allocation4], %s727_s9 }
 0x10f   : > { %p790_p2 = pnand %p793_p1, %p1018_p6 }
 0x111   : > { %902 = dma.done.wait (!%p790_p2), %s728_s14, 32  }
 0x112   : > { %904 = vsyncadd (!%p790_p2), %s728_s14, 4294967264  ;;  %p19_p3 = scmp.ge.s32.totalorder %s1001_s8, 6   ;;  %s1185_s26 = smov %s911_s27 }
 0x113   : > { %s1186_s27 = smov %s915_s28  ;;  %s1187_s28 = smov %s1012_s11 }
 0x114   : > { %s1188_s29 = smov %s1001_s8  ;;  %21 = sbr.rel (!%p19_p3) target bundleno = 6 (0x6), region = 83 }
 0x11b   :  { %733 = vsyncpa [#allocation4], 1 }
 0x11c   :  { %735 = vsyncpa [#allocation4 + $0x1], 1 }

</bundles_post_ra>
